<compile_context>
chip_gen: v7x
topology: tpu7x:2x2x1
jax: 0.10.0
libtpu: 0.0.40
codegen_flags: <defaults>
</compile_context>

<pallas_src>
import functools

import jax
import jax.numpy as jnp
from jax import lax
from jax.experimental import pallas as pl
from jax.experimental.pallas import tpu as pltpu


def _round_up(x, m):
    return ((x + m - 1) // m) * m


def _choose_tile(n_rows, batch_steps, max_tile, row_bytes,
                 vmem_budget=40 * 1024 * 1024):
    """Pick a row tile: as large as possible subject to
    (a) double-buffered in+out blocks fitting a VMEM budget and
    (b) keeping >= 4 total grid steps (>= 2 per TensorCore on v7x megacore)."""
    vmem_cap = max(8, (vmem_budget // max(row_bytes, 1)) // 8 * 8)
    tile = min(max_tile, vmem_cap)
    min_tiles = pl.cdiv(4, max(batch_steps, 1))
    tile = min(tile, _round_up(pl.cdiv(n_rows, min_tiles), 8))
    return max(tile, 8)


# ----------------------------------------------------------------------------
# Kernel 1: fused affine(InstanceNorm) + ELU + 1x1 Conv (as lane-folded matmul)
# ----------------------------------------------------------------------------
def linear1_kernel(x_ref, scale_ref, shift_ref, w_ref, b_ref, o_ref, *, mxu_dtype):
    # x_ref:     (TILE, Lw)   lane-dense folded input rows (Lw = G*Cin)
    # scale_ref: (1, Lw)      gamma * rstd, lane-tiled, per batch element
    # shift_ref: (1, Lw)      beta - mean*gamma*rstd, lane-tiled, per batch element
    # w_ref:     (Lw, Dout)   kron(I_G, W^T), Dout = G*D (lane-dense output)
    # b_ref:     (1, Dout)
    x = x_ref[...]
    xa = x * scale_ref[...] + shift_ref[...]
    # ELU(alpha=1); exp only on the non-positive branch so it can never overflow.
    xe = jnp.where(xa > 0, xa, jnp.exp(jnp.minimum(xa, 0.0)) - 1.0)
    y = jnp.dot(xe.astype(mxu_dtype), w_ref[...],
                preferred_element_type=jnp.float32) + b_ref[...]
    o_ref[...] = y.astype(o_ref.dtype)


def run_linear1(x_rows, scale, shift, w_t, bias, *, tile_pd=2048,
                mxu_dtype=jnp.float32, out_dtype=jnp.float32):
    # x_rows: (B, P, Cin) f32; scale/shift: (B, Cin); w_t: (Cin, D); bias: (D,)
    B, P, Cin = x_rows.shape
    D = w_t.shape[1]

    # Fold factor: pack G spatial rows into one 128-lane row when possible.
    G = 128 // Cin if (Cin <= 128 and 128 % Cin == 0) else 1
    Lw = G * Cin
    Dout = G * D

    # Pad only to the fold requirement (multiple of G rows), never to the tile:
    # the partial last grid block is handled by Pallas masked stores.
    P_pad = _round_up(P, G)
    if P_pad != P:
        x_rows = jnp.pad(x_rows, ((0, 0), (0, P_pad - P), (0, 0)))
    Pd = P_pad // G
    x_f = x_rows.reshape(B, Pd, Lw)          # bit-identical row-major fold

    row_bytes = 2 * (Lw * x_f.dtype.itemsize + Dout * jnp.dtype(out_dtype).itemsize)
    tile = _choose_tile(Pd, B, tile_pd, row_bytes)

    scale_f = jnp.tile(scale, (1, G)).reshape(B, 1, Lw).astype(jnp.float32)
    shift_f = jnp.tile(shift, (1, G)).reshape(B, 1, Lw).astype(jnp.float32)
    w_big = jnp.kron(jnp.eye(G, dtype=w_t.dtype), w_t).astype(mxu_dtype)  # (Lw, Dout)
    b_big = jnp.tile(bias, (G,)).reshape(1, Dout).astype(jnp.float32)

    kernel = functools.partial(linear1_kernel, mxu_dtype=mxu_dtype)
    out = pl.pallas_call(
        kernel,
        out_shape=jax.ShapeDtypeStruct((B, Pd, Dout), out_dtype),
        grid=(B, pl.cdiv(Pd, tile)),
        in_specs=[
            pl.BlockSpec((None, tile, Lw), lambda b, p: (b, p, 0)),
            pl.BlockSpec((None, 1, Lw), lambda b, p: (b, 0, 0)),
            pl.BlockSpec((None, 1, Lw), lambda b, p: (b, 0, 0)),
            pl.BlockSpec((Lw, Dout), lambda b, p: (0, 0)),
            pl.BlockSpec((1, Dout), lambda b, p: (0, 0)),
        ],
        out_specs=pl.BlockSpec((None, tile, Dout), lambda b, p: (b, p, 0)),
        compiler_params=pltpu.CompilerParams(
            dimension_semantics=("parallel", "parallel"),
            vmem_limit_bytes=48 * 1024 * 1024,
        ),
    )(x_f, scale_f, shift_f, w_big, b_big)

    # Undo fold + (tiny) fold-padding; the reshape is layout-wise a no-op.
    return out.reshape(B, Pd * G, D)[:, :P, :]


# ----------------------------------------------------------------------------
# Kernel 2: m = token_emb[msa] + msa_emb @ W_le^T + b_le   (lane-folded)
# ----------------------------------------------------------------------------
def msa_embed_kernel(tok_ref, emb_ref, table_ref, w_ref, b_ref, o_ref, *, mxu_dtype):
    # tok_ref:   (TILE, Ge)      int32 token ids, Ge original rows per folded row
    # emb_ref:   (TILE, Ge*Demb) folded msa_emb rows
    # table_ref: (T, Ge*D)       embedding table, lane-tiled Ge times
    # w_ref:     (Ge*Demb, Ge*D) kron(I_Ge, W_le^T)
    # b_ref:     (1, Ge*D)
    rows, Ge = tok_ref.shape
    T = table_ref.shape[0]
    Dl = o_ref.shape[1]
    D = Dl // Ge

    tok = tok_ref[...]
    # Per-lane token id: lane l belongs to sub-row l // D of the folded row.
    lane_sub = lax.broadcasted_iota(jnp.int32, (rows, Dl), 1) // D
    tok_lane = jnp.zeros((rows, Dl), jnp.int32)
    for j in range(Ge):                                  # static, unrolled (VPU selects)
        tok_lane = jnp.where(lane_sub == j, tok[:, j:j + 1], tok_lane)

    # Embedding lookup as a select-sum over the (tiny) vocab -- no one-hot MXU matmul.
    tokemb = jnp.zeros((rows, Dl), jnp.float32)
    for t in range(T):                                   # static, unrolled
        tokemb = tokemb + jnp.where(tok_lane == t,
                                    table_ref[t:t + 1, :].astype(jnp.float32), 0.0)

    y = tokemb + jnp.dot(emb_ref[...].astype(mxu_dtype), w_ref[...],
                         preferred_element_type=jnp.float32) + b_ref[...]
    o_ref[...] = y.astype(o_ref.dtype)


def run_msa_embed(tok, emb, table, wle_t, ble, *, tile_rf=1024,
                  mxu_dtype=jnp.float32, out_dtype=jnp.float32):
    # tok: (R,) int32; emb: (R, Demb); table: (T, D); wle_t: (Demb, D); ble: (D,)
    R = tok.shape[0]
    Demb = emb.shape[1]
    T, D = table.shape

    Ge = 128 // D if (D <= 128 and 128 % D == 0) else 1  # rows per 128-lane output row
    Le = Ge * Demb
    Dout = Ge * D

    # Pad only to the fold requirement (multiple of Ge rows); the partial last
    # grid block is handled by masked stores.
    R_pad = _round_up(R, Ge)
    if R_pad != R:
        tok = jnp.pad(tok, (0, R_pad - R))               # token 0 on padded rows: dropped
        emb = jnp.pad(emb, ((0, R_pad - R), (0, 0)))
    Rf = R_pad // Ge
    tok_f = tok.reshape(Rf, Ge)
    emb_f = emb.reshape(Rf, Le)

    row_bytes = 2 * (128 * 4 + Le * emb_f.dtype.itemsize
                     + Dout * jnp.dtype(out_dtype).itemsize)
    tile = _choose_tile(Rf, 1, tile_rf, row_bytes)

    table_t = jnp.tile(table, (1, Ge)).astype(jnp.float32)            # (T, Dout)
    w_big = jnp.kron(jnp.eye(Ge, dtype=wle_t.dtype), wle_t).astype(mxu_dtype)  # (Le, Dout)
    b_big = jnp.tile(ble, (Ge,)).reshape(1, Dout).astype(jnp.float32)

    kernel = functools.partial(msa_embed_kernel, mxu_dtype=mxu_dtype)
    out = pl.pallas_call(
        kernel,
        out_shape=jax.ShapeDtypeStruct((Rf, Dout), out_dtype),
        grid=(pl.cdiv(Rf, tile),),
        in_specs=[
            pl.BlockSpec((tile, Ge), lambda i: (i, 0)),
            pl.BlockSpec((tile, Le), lambda i: (i, 0)),
            pl.BlockSpec((T, Dout), lambda i: (0, 0)),
            pl.BlockSpec((Le, Dout), lambda i: (0, 0)),
            pl.BlockSpec((1, Dout), lambda i: (0, 0)),
        ],
        out_specs=pl.BlockSpec((tile, Dout), lambda i: (i, 0)),
        compiler_params=pltpu.CompilerParams(
            dimension_semantics=("parallel",),
            vmem_limit_bytes=48 * 1024 * 1024,
        ),
    )(tok_f, emb_f, table_t, w_big, b_big)

    return out.reshape(Rf * Ge, D)[:R, :]


# ----------------------------------------------------------------------------
# Forward wrapper (mirrors RNAformer.forward with preprocess=True, return_msa=True)
# ----------------------------------------------------------------------------
def rnaformer_forward(f2d, msa, msa_emb, params,
                      *, mxu_dtype=jnp.float32, out_dtype=jnp.float32):
    B, L, _, Cin = f2d.shape
    D = params["w_conv"].shape[0]          # conv weight: (dim, in_dim)
    P = L * L

    # InstanceNorm2d statistics: per-(batch, channel) over the L*L spatial
    # positions, computed in a SINGLE fused pass (shifted mean / mean-of-squares,
    # exact and numerically stable) so f2d is read from HBM only twice total
    # (once here, once inside the Pallas kernel).
    x_rows = f2d.astype(jnp.float32).reshape(B, P, Cin)
    ref_row = lax.stop_gradient(x_rows[:, :1, :])                     # (B, 1, Cin)
    d = x_rows - ref_row
    s1 = jnp.mean(d, axis=1)                                          # (B, Cin)
    s2 = jnp.mean(d * d, axis=1)                                      # (B, Cin)
    mean = ref_row[:, 0, :] + s1
    var = jnp.maximum(s2 - s1 * s1, 0.0)                              # biased variance
    rstd = lax.rsqrt(var + 1e-5)
    scale = params["gamma"][None, :] * rstd                           # (B, Cin)
    shift = params["beta"][None, :] - mean * scale

    x_flat = run_linear1(
        x_rows, scale, shift,
        jnp.transpose(params["w_conv"]).astype(jnp.float32),          # (Cin, D)
        params["b_conv"].astype(jnp.float32),
        mxu_dtype=mxu_dtype, out_dtype=out_dtype,
    )
    x = x_flat.reshape(B, L, L, D)

    # m = token_emb(msa) + linear_emb(msa_emb)
    Bm, Nm, Lm = msa.shape
    R = Bm * Nm * Lm
    m_flat = run_msa_embed(
        msa.reshape(R).astype(jnp.int32),
        msa_emb.astype(jnp.float32).reshape(R, -1),
        params["table"].astype(jnp.float32),
        jnp.transpose(params["w_le"]).astype(jnp.float32),            # (Demb, D)
        params["b_le"].astype(jnp.float32),
        mxu_dtype=mxu_dtype, out_dtype=out_dtype,
    )
    m = m_flat.reshape(Bm, Nm, Lm, D)

    # TODO(synk): RelPos positional embedding and the depth x BasicBlock stack are
    # not defined in the provided source; x and m pass through unchanged here.
    return x, m


# ----------------------------------------------------------------------------
# Pure-JAX reference (same math) for a correctness check.
# ----------------------------------------------------------------------------
def reference_forward(f2d, msa, msa_emb, params):
    x = f2d
    mean = jnp.mean(x, axis=(1, 2), keepdims=True)
    var = jnp.mean((x - mean) ** 2, axis=(1, 2), keepdims=True)
    xn = (x - mean) / jnp.sqrt(var + 1e-5)
    xa = xn * params["gamma"] + params["beta"]
    xe = jnp.where(xa > 0, xa, jnp.exp(jnp.minimum(xa, 0.0)) - 1.0)
    xo = jnp.einsum("blkc,dc->blkd", xe, params["w_conv"]) + params["b_conv"]
    m = params["table"][msa] + (
        jnp.einsum("bnle,de->bnld", msa_emb, params["w_le"]) + params["b_le"]
    )
    return xo, m


if __name__ == "__main__":
    B, L, N = 2, 16, 4
    IN_DIM, DIM, EMB_DIM, NUM_TOKENS = 8, 32, 32, 5

    key = jax.random.PRNGKey(0)
    ks = jax.random.split(key, 10)

    f2d = jax.random.normal(ks[0], (B, L, L, IN_DIM), jnp.float32)
    msa = jax.random.randint(ks[1], (B, N, L), 0, NUM_TOKENS, jnp.int32)
    msa_emb = jax.random.normal(ks[2], (B, N, L, EMB_DIM), jnp.float32)

    params = {
        "gamma": jax.random.normal(ks[3], (IN_DIM,), jnp.float32) * 0.1 + 1.0,
        "beta": jax.random.normal(ks[4], (IN_DIM,), jnp.float32) * 0.1,
        "w_conv": jax.random.normal(ks[5], (DIM, IN_DIM), jnp.float32) * 0.1,
        "b_conv": jax.random.normal(ks[6], (DIM,), jnp.float32) * 0.1,
        "table": jax.random.normal(ks[7], (NUM_TOKENS, DIM), jnp.float32),
        "w_le": jax.random.normal(ks[8], (DIM, EMB_DIM), jnp.float32) * 0.1,
        "b_le": jax.random.normal(ks[9], (DIM,), jnp.float32) * 0.1,
    }

    x_out, m_out = rnaformer_forward(f2d, msa, msa_emb, params)
    jax.block_until_ready((x_out, m_out))

    x_ref, m_ref = reference_forward(f2d, msa, msa_emb, params)
    assert x_out.shape == (B, L, L, DIM) and m_out.shape == (B, N, L, DIM)
    assert jnp.allclose(x_out, x_ref, atol=1e-4, rtol=1e-4)
    assert jnp.allclose(m_out, m_ref, atol=1e-4, rtol=1e-4)

    print("KERNEL_OK")
</pallas_src>

<mosaic_0001>
module attributes {stable_mosaic.version = 11 : i64} {
  func.func @linear1_kernel(%arg0: i32, %arg1: i32, %arg2: memref<1x8x128xf32, #tpu.memory_space<vmem>>, %arg3: memref<1x1x128xf32, #tpu.memory_space<vmem>>, %arg4: memref<1x1x128xf32, #tpu.memory_space<vmem>>, %arg5: memref<128x512xf32, #tpu.memory_space<vmem>>, %arg6: memref<1x512xf32, #tpu.memory_space<vmem>>, %arg7: memref<1x8x512xf32, #tpu.memory_space<vmem>>) attributes {dimension_semantics = [#tpu.dimension_semantics<parallel>, #tpu.dimension_semantics<parallel>], iteration_bounds = array<i64: 2, 2>, scalar_prefetch = 0 : i64, scratch_operands = 0 : i64, tpu.core_type = #tpu.core_type<tc>, window_params = [{transform_indices = @transform_0, window_bounds = array<i64: 1, 8, 128>}, {transform_indices = @transform_1, window_bounds = array<i64: 1, 1, 128>}, {transform_indices = @transform_2, window_bounds = array<i64: 1, 1, 128>}, {pipeline_mode = #tpu.pipeline_mode<synchronous>, transform_indices = @transform_3, window_bounds = array<i64: 128, 512>}, {pipeline_mode = #tpu.pipeline_mode<synchronous>, transform_indices = @transform_4, window_bounds = array<i64: 1, 512>}, {transform_indices = @transform_5, window_bounds = array<i64: 1, 8, 512>}]} {
    %c0 = arith.constant 0 : index
    %c0_0 = arith.constant 0 : index
    %c0_1 = arith.constant 0 : index
    %0 = vector.load %arg2[%c0, %c0_0, %c0_1] : memref<1x8x128xf32, #tpu.memory_space<vmem>>, vector<1x8x128xf32>
    %1 = vector.shape_cast %0 : vector<1x8x128xf32> to vector<8x128xf32>
    %c0_2 = arith.constant 0 : index
    %c0_3 = arith.constant 0 : index
    %c0_4 = arith.constant 0 : index
    %2 = vector.load %arg3[%c0_2, %c0_3, %c0_4] : memref<1x1x128xf32, #tpu.memory_space<vmem>>, vector<1x1x128xf32>
    %3 = vector.shape_cast %2 : vector<1x1x128xf32> to vector<1x128xf32>
    %4 = vector.broadcast %3 : vector<1x128xf32> to vector<8x128xf32>
    %5 = arith.mulf %1, %4 : vector<8x128xf32>
    %c0_5 = arith.constant 0 : index
    %c0_6 = arith.constant 0 : index
    %c0_7 = arith.constant 0 : index
    %6 = vector.load %arg4[%c0_5, %c0_6, %c0_7] : memref<1x1x128xf32, #tpu.memory_space<vmem>>, vector<1x1x128xf32>
    %7 = vector.shape_cast %6 : vector<1x1x128xf32> to vector<1x128xf32>
    %8 = vector.broadcast %7 : vector<1x128xf32> to vector<8x128xf32>
    %9 = arith.addf %5, %8 : vector<8x128xf32>
    %cst = arith.constant 0.000000e+00 : f32
    %10 = vector.broadcast %cst : f32 to vector<8x128xf32>
    %11 = arith.cmpf ogt, %9, %10 : vector<8x128xf32>
    %cst_8 = arith.constant 0.000000e+00 : f32
    %12 = vector.broadcast %cst_8 : f32 to vector<8x128xf32>
    %13 = arith.minimumf %9, %12 : vector<8x128xf32>
    %14 = math.exp %13 : vector<8x128xf32>
    %cst_9 = arith.constant 1.000000e+00 : f32
    %15 = vector.broadcast %cst_9 : f32 to vector<8x128xf32>
    %16 = arith.subf %14, %15 : vector<8x128xf32>
    %17 = arith.select %11, %9, %16 : vector<8x128xi1>, vector<8x128xf32>
    %c0_10 = arith.constant 0 : index
    %c0_11 = arith.constant 0 : index
    %18 = vector.load %arg5[%c0_10, %c0_11] : memref<128x512xf32, #tpu.memory_space<vmem>>, vector<128x512xf32>
    %cst_12 = arith.constant dense<0.000000e+00> : vector<8x512xf32>
    %19 = tpu.matmul %17, %18, %cst_12 {dimension_numbers = #tpu.dot_dimension_numbers<[1], [0], [0], [1], [0, 0, 1, 1], [], []>} : vector<8x128xf32>, vector<128x512xf32>, vector<8x512xf32> -> vector<8x512xf32>
    %c0_13 = arith.constant 0 : index
    %c0_14 = arith.constant 0 : index
    %20 = vector.load %arg6[%c0_13, %c0_14] : memref<1x512xf32, #tpu.memory_space<vmem>>, vector<1x512xf32>
    %21 = vector.broadcast %20 : vector<1x512xf32> to vector<8x512xf32>
    %22 = arith.addf %19, %21 : vector<8x512xf32>
    %c0_15 = arith.constant 0 : index
    %c0_16 = arith.constant 0 : index
    %c0_17 = arith.constant 0 : index
    %23 = vector.load %arg7[%c0_15, %c0_16, %c0_17] : memref<1x8x512xf32, #tpu.memory_space<vmem>>, vector<1x8x512xf32>
    %24 = vector.shape_cast %23 : vector<1x8x512xf32> to vector<8x512xf32>
    %25 = vector.shape_cast %22 : vector<8x512xf32> to vector<1x8x512xf32>
    tpu.vector_store %arg7[%c0_15, %c0_16, %c0_17], %25 {strides = array<i32>} : memref<1x8x512xf32, #tpu.memory_space<vmem>>, vector<1x8x512xf32>,
    return
  }
  func.func @transform_0(%arg0: i32, %arg1: i32) -> (i32, i32, i32) {
    %c0_i32 = arith.constant 0 : i32
    %c0_i32_0 = arith.constant 0 : i32
    return %arg0, %arg1, %c0_i32 : i32, i32, i32
  }
  func.func @transform_1(%arg0: i32, %arg1: i32) -> (i32, i32, i32) {
    %c0_i32 = arith.constant 0 : i32
    %c0_i32_0 = arith.constant 0 : i32
    %c0_i32_1 = arith.constant 0 : i32
    return %arg0, %c0_i32, %c0_i32_0 : i32, i32, i32
  }
  func.func @transform_2(%arg0: i32, %arg1: i32) -> (i32, i32, i32) {
    %c0_i32 = arith.constant 0 : i32
    %c0_i32_0 = arith.constant 0 : i32
    %c0_i32_1 = arith.constant 0 : i32
    return %arg0, %c0_i32, %c0_i32_0 : i32, i32, i32
  }
  func.func @transform_3(%arg0: i32, %arg1: i32) -> (i32, i32) {
    %c0_i32 = arith.constant 0 : i32
    %c0_i32_0 = arith.constant 0 : i32
    %c0_i32_1 = arith.constant 0 : i32
    return %c0_i32, %c0_i32_0 : i32, i32
  }
  func.func @transform_4(%arg0: i32, %arg1: i32) -> (i32, i32) {
    %c0_i32 = arith.constant 0 : i32
    %c0_i32_0 = arith.constant 0 : i32
    %c0_i32_1 = arith.constant 0 : i32
    return %c0_i32, %c0_i32_0 : i32, i32
  }
  func.func @transform_5(%arg0: i32, %arg1: i32) -> (i32, i32, i32) {
    %c0_i32 = arith.constant 0 : i32
    %c0_i32_0 = arith.constant 0 : i32
    return %arg0, %arg1, %c0_i32 : i32, i32, i32
  }
}

</mosaic_0001>

<bundles_post_ra>
// kernel: tpu_custom_call.1
= control target key start
LH: loop header
LB: loop body
LE: loop exit
PB: predicated region body
PF: predicated region fallthrough
CT: control target
= control target key end

     0   :  { %s1529_s0 = inlined_call_operand.hbm [shape: f32[2,16,128], index: 0, kind: input, shape index: {}]   ;;  %s1530_s1 = inlined_call_operand.vmem [shape: f32[2,1,128], index: 1, kind: input, shape index: {}]   ;;  %s1531_s2 = inlined_call_operand.hbm [shape: f32[2,1,128], index: 2, kind: input, shape index: {}]   ;;  %s1532_s3 = inlined_call_operand.hbm [shape: f32[128,512], index: 3, kind: input, shape index: {}]   ;;  %s1533_s4 = inlined_call_operand.vmem [shape: f32[1,512], index: 4, kind: input, shape index: {}]   ;;  %s1534_s5 = inlined_call_operand.hbm [shape: f32[2,16,512], index: 5, kind: output, shape index: {}]  }
   0x1   :  { %1547 = sst [smem:[#allocation18_spill]] %s1530_s1 }
   0x2   :  { %1548 = sst [smem:[#allocation19_spill]] %s1532_s3 }
   0x3   :  { %1549 = sst [smem:[#allocation20_spill]] %s1533_s4 }
   0x4   :  { %1550 = sst [smem:[#allocation21_spill]] %s1534_s5 }
   0x5   :  { %10 = vsyncpa [#allocation3], 0 }
   0x6   :  { %12 = vsyncpa [#allocation3 + $0x1], 0 }
   0x7   :  { %13 = vsyncpa [#allocation6], 0 }
   0x8   :  { %15 = vsyncpa [#allocation6 + $0x1], 0 }
   0x9   :  { %16 = vsyncpa [#allocation4], 0 }
   0xa   :  { %18 = vsyncpa [#allocation4 + $0x1], 0  ;;  %s1182_s18 = smov 0   ;;  %s1184_s19 = smov 0  }
   0xb   :  { %s1186_s20 = smov 0   ;;  %s1188_s21 = smov 0  }
   0xc   :  { %s1190_s22 = smov 0   ;;  %s1192_s23 = smov 0  }
   0xd   :  { %s1194_s24 = smov 0   ;;  %s1196_s25 = smov 0  }
   0xe   :  { %s1198_s26 = smov 0   ;;  %s1200_s27 = smov 0  }
   0xf   :  { %s1202_s28 = smov 0  }
  0x10 LB: > { %1551 = sst [smem:[#allocation13_spill]] %s1115_s21  ;;  %s1238_s29 = sadd.s32 4294967295, %s1143_s28   ;;  %s1143_s28 = sphi %s1202_s28, %s24_s28   ;;  %s1139_s27 = sphi %s1200_s27, %s1594_s27   ;;  %s1135_s26 = sphi %s1198_s26, %s1593_s26   ;;  %s1131_s25 = sphi %s1196_s25, %s1592_s25   ;;  %s1127_s24 = sphi %s1194_s24, %s1591_s24   ;;  %s1123_s23 = sphi %s1192_s23, %s1590_s23   ;;  %s1119_s22 = sphi %s1190_s22, %s1589_s22   ;;  %s1115_s21 = sphi %s1188_s21, %s1588_s21   ;;  %s1111_s20 = sphi %s1186_s20, %s1587_s20   ;;  %s1107_s19 = sphi %s1184_s19, %s1586_s19   ;;  %s1103_s18 = sphi %s1182_s18, %s1585_s18  }
  0x11   : > { %1552 = sst [smem:[#allocation14_spill]] %s1127_s24  ;;  %p718_p0 = scmp.ge.s32.totalorder %s1143_s28, 1 }
  0x12   : > { %p1535_p1 = scmp.eq.s32.totalorder %s1238_s29, 0  ;;  %p191_p2 = scmp.lt.s32.totalorder %s1143_s28, 5 }
  0x13   : > { %s1145_s6 = smov [#allocation7]   ;;  %s1555_s3 = sld [smem:[#allocation19_spill]] }
  0x14   : > { %p1243_p3 = pnand %p718_p0, %p191_p2  ;;  %s203_s7 = sshll.u32 %s1145_s6, 4  ;;  %s204_s7 = int_to_ptr.vmem [resolvable:$true] %s203_s7 }
  0x16   : > { %s1553_s30 = scalar_select %p1243_p3, 1, 0 }
  0x17   : > { %p812_p4 = pneg %p1243_p3 }
  0x19   : > { %p1251_p5 = pnand %p812_p4, %p1535_p1  ;;  %s925_s11 = scalar_lea.hbm %s1555_s3, 8192 }
  0x1a   : > { %p926_p6 = scmp.ne.s32.totalorder %s1555_s3, %s925_s11  ;;  %p932_p10 = scmp.lt.u32.totalorder %s925_s11, %s1555_s3 }
  0x1b   : > { %p927_p7 = pneg %p1251_p5 }
  0x1d   : > { %p928_p8 = pnand %p927_p7, %p926_p6 }
  0x1f   : > { %p929_p9 = pneg %p928_p8 }
  0x21   : > { %p934_p11 = pnand %p932_p10, %p929_p9 }
  0x23   : > { %937 = shalt.err (!%p934_p11)
}
  0x24   : > { %s938_s16 = scalar_lea.vmem %s204_s7, 8192  ;;  %p946_p2 = scmp.lt.s32.totalorder %s204_s7, %s204_s7 }
  0x25   : > { %p939_p12 = scmp.ne.s32.totalorder %s204_s7, %s938_s16  ;;  %p947_p4 = scmp.lt.s32.totalorder %s938_s16, %s938_s16 }
  0x27   : > { %p941_p13 = pnand %p939_p12, %p927_p7  ;;  %p948_p1 = por %p947_p4, %p946_p2 }
  0x29   : > { %p942_p0 = pneg %p941_p13 }
  0x2b   : > { %p949_p3 = pnand %p948_p1, %p942_p0 }
  0x2d   : > { %952 = shalt.err (!%p949_p3)
}
  0x2e   : > { %s1146_s17 = smov 512   ;;  %s1147_s6 = smov 32  }
  0x2f   : > { %815 = dma.hbm_to_vmem [thread:$0]  (!%p1251_p5), %s1555_s3, 8192, %s204_s7, [#allocation6], %s1146_s17, %s1146_s17, %s1147_s6  }
  0x30   : > { %s717_s11 = sadd.s32 4294967294, %s1143_s28   ;;  %s33_s12 = sadd.s32 1, %s1135_s26 }
  0x31   : > { %s36_s13 = sadd.s32 1, %s1139_s27  ;;  %p34_p1 = scmp.ge.s32.totalorder %s33_s12, 2 }
  0x32   : > { %s45_s14 = sadd.s32 1, %s1123_s23  ;;  %p52_p3 = scmp.ne.s32.totalorder %s1123_s23, %s1119_s22 }
  0x33   : > { %p1544_p6 = scmp.eq.s32.totalorder %s1143_s28, 0  ;;  %s1596_s12 = smov (%p34_p1, %s33_s12), 0 }
  0x34   : > { %1556 = sst [smem:[#allocation15_spill]] %s1596_s12  ;;  %s1598_s13 = smov (!%p34_p1, %s36_s13), %s1139_s27 }
  0x35   : > { %s41_s8 = ssub.s32 %s1135_s26, %s1596_s12  ;;  %p1285_p7 = por %p1544_p6, %p52_p3 }
  0x36   : > { %p38_p5 = scmp.ge.s32.totalorder %s1598_s13, 2  ;;  %p58_p8 = scmp.ne.s32.totalorder %s1119_s22, %s1115_s21 }
  0x37   : > { %p178_p9 = scmp.eq.s32.totalorder %s1238_s29, 3  ;;  %p184_p10 = scmp.eq.s32.totalorder %s717_s11, 3 }
  0x38   : > { %s1600_s13 = smov (%p38_p5, %s1598_s13), 0  ;;  %p1559_p11 = scmp.eq.s32.totalorder %s1238_s29, 0 }
  0x39   : > { %1558 = sst [smem:[#allocation16_spill]] %s1600_s13  ;;  %p1300_p13 = por %p178_p9, %p52_p3 }
  0x3a   : > { %p1296_p12 = por %p1559_p11, %p58_p8  ;;  %s1306_s17 = ssub.s32 %s1139_s27, %s1600_s13 }
  0x3b   : > { %s1561_s16 = scalar_select %p1300_p13, 1, 0 }
  0x3c   : > { %p1308_p0 = por %p184_p10, %p58_p8  ;;  %s42_s9 = sor.u32 %s41_s8, %s1306_s17 }
  0x3d   : > { %1562 = sst [smem:[#allocation17_spill]] %s1561_s16  ;;  %p43_p4 = scmp.eq.s32.totalorder %s42_s9, 0 }
  0x3e   : > { %s1563_s6 = scalar_select %p1308_p0, 1, 0 }
  0x3f   : > { %p1543_p1 = scmp.lt.s32.totalorder %s1143_s28, 4  ;;  %s220_s10 = sand.u32 1, %s1123_s23  }
  0x40   : > { %s722_s11 = sshll.u32 %s1139_s27, 1  ;;  %s721_s12 = sshll.u32 %s220_s10, 3 }
  0x41   : > { %s1318_s3 = scalar_select %p43_p4, %s1123_s23, %s45_s14  }
  0x42   : > { %s229_s21 = sadd.s32 %s1135_s26, %s722_s11  ;;  %s224_s5 = scalar_lea.vmem [#allocation2], %s721_s12 }
  0x43   : > { %s723_s13 = sshll.u32 %s229_s21, 7  ;;  %s233_s16 = sshll.u32 %s224_s5, 4  ;;  %s1326_s16 = int_to_ptr.vmem [resolvable:$true] %s233_s16 }
  0x44   : > { %s1324_s1 = scalar_lea.hbm %s1529_s0, %s723_s13  ;;  %p1332_p3 = pnand %p1543_p1, %p1285_p7 }
  0x45   : > { %s221_s5 = scalar_lea.sflag [#allocation3], %s220_s10  ;;  %s953_s21 = scalar_lea.hbm %s1324_s1, 128 }
  0x46   : > { %p954_p5 = scmp.ne.s32.totalorder %s1324_s1, %s953_s21  ;;  %p955_p8 = pneg %p1332_p3 }
  0x47   : > { %s958_s12 = scalar_lea.hbm %s1529_s0, 512  ;;  %p959_p7 = scmp.lt.u32.totalorder %s1324_s1, %s1529_s0 }
  0x48   : > { %p956_p9 = pnand %p955_p8, %p954_p5  ;;  %p960_p11 = scmp.lt.u32.totalorder %s958_s12, %s953_s21 }
  0x49   : > { %p962_p1 = scmp.lt.u32.totalorder %s953_s21, %s1324_s1 }
  0x4a   : > { %p957_p10 = pneg %p956_p9  ;;  %p961_p4 = por %p960_p11, %p959_p7 }
  0x4c   : > { %p963_p6 = por %p962_p1, %p961_p4 }
  0x4e   : > { %p964_p2 = pnand %p963_p6, %p957_p10 }
  0x50   : > { %967 = shalt.err (!%p964_p2)
}
  0x51   : > { %s968_s7 = scalar_lea.vmem %s1326_s16, 128  ;;  %s1148_s9 = smov [#allocation2]  }
  0x52   : > { %p969_p5 = scmp.ne.s32.totalorder %s1326_s16, %s968_s7  ;;  %s973_s10 = sshll.u32 %s1148_s9, 4  ;;  %s974_s10 = int_to_ptr.vmem [resolvable:$false] %s973_s10 }
  0x53   : > { %s975_s11 = scalar_lea.vmem %s974_s10, 256  ;;  %p976_p13 = scmp.lt.s32.totalorder %s1326_s16, %s974_s10 }
  0x54   : > { %p971_p9 = pnand %p969_p5, %p955_p8  ;;  %p977_p7 = scmp.lt.s32.totalorder %s975_s11, %s968_s7 }
  0x56   : > { %p972_p0 = pneg %p971_p9  ;;  %p978_p11 = por %p977_p7, %p976_p13 }
  0x58   : > { %p979_p1 = pnand %p978_p11, %p972_p0 }
  0x5a   : > { %982 = shalt.err (!%p979_p1)
}
  0x5b   : > { %819 = dma.hbm_to_vmem [thread:$0]  (!%p1332_p3), %s1324_s1, 128, %s1326_s16, %s221_s5  }
  0x5c   : > { %s97_s21 = sadd.s32 1, %s1111_s20  ;;  %p104_p6 = scmp.ne.s32.totalorder %s1111_s20, %s1107_s19 }
  0x5d   : > { %p1565_p13 = scmp.eq.s32.totalorder %s1306_s17, 0  ;;  %p1566_p0 = scmp.eq.s32.totalorder %s1143_s28, 0 }
  0x5e   : > { %p110_p8 = scmp.ne.s32.totalorder %s1107_s19, %s1103_s18  ;;  %s246_s4 = sand.u32 1, %s1143_s28  }
  0x5f   : > { %s1367_s14 = scalar_select %p1565_p13, %s1111_s20, %s97_s21  }
  0x60   : > { %p106_p2 = por %p104_p6, %p1566_p0  ;;  %s248_s24 = sand.u32 1, %s1111_s20  }
  0x61   : > { %p1567_p10 = scmp.eq.s32.totalorder %s1238_s29, 0  ;;  %s724_s13 = sshll.u32 %s1139_s27, 4 }
  0x62   : > { %s1385_s1 = scalar_lea.hbm %s1531_s2, %s724_s13  ;;  %s249_s16 = scalar_lea.vmem [#allocation5], %s248_s24 }
  0x63   : > { %p1377_p4 = por %p110_p8, %p1567_p10  ;;  %s256_s17 = sshll.u32 %s249_s16, 4  ;;  %s1387_s17 = int_to_ptr.vmem [resolvable:$true] %s256_s17 }
  0x64   : > { %p1569_p3 = scmp.lt.s32.totalorder %s1143_s28, 4  ;;  %s247_s5 = scalar_lea.sflag [#allocation6], %s246_s4 }
  0x65   : > { %s1568_s12 = scalar_select %p1377_p4, 1, 0 }
  0x66   : > { %p1391_p5 = pnand %p1569_p3, %p106_p2  ;;  %s983_s9 = scalar_lea.hbm %s1385_s1, 16 }
  0x67   : > { %p984_p9 = scmp.ne.s32.totalorder %s1385_s1, %s983_s9  ;;  %s988_s21 = scalar_lea.hbm %s1531_s2, 32 }
  0x68   : > { %p985_p7 = pneg %p1391_p5  ;;  %p989_p6 = scmp.lt.u32.totalorder %s1385_s1, %s1531_s2 }
  0x69   : > { %p990_p13 = scmp.lt.u32.totalorder %s988_s21, %s983_s9  ;;  %p992_p2 = scmp.lt.u32.totalorder %s983_s9, %s1385_s1 }
  0x6a   : > { %p986_p11 = pnand %p985_p7, %p984_p9 }
  0x6b   : > { %p991_p0 = por %p990_p13, %p989_p6 }
  0x6c   : > { %p987_p1 = pneg %p986_p11 }
  0x6d   : > { %p993_p8 = por %p992_p2, %p991_p0 }
  0x6f   : > { %p994_p10 = pnand %p993_p8, %p987_p1 }
  0x71   : > { %997 = shalt.err (!%p994_p10)
}
  0x72   : > { %s998_s4 = scalar_lea.vmem %s1387_s17, 16  ;;  %s1149_s8 = smov [#allocation5]  }
  0x73   : > { %p999_p3 = scmp.ne.s32.totalorder %s1387_s17, %s998_s4  ;;  %s1003_s7 = sshll.u32 %s1149_s8, 4  ;;  %s1004_s7 = int_to_ptr.vmem [resolvable:$false] %s1003_s7 }
  0x74   : > { %s1005_s16 = scalar_lea.vmem %s1004_s7, 32  ;;  %p1006_p4 = scmp.lt.s32.totalorder %s1387_s17, %s1004_s7 }
  0x75   : > { %p1001_p9 = pnand %p999_p3, %p985_p7  ;;  %p1007_p6 = scmp.lt.s32.totalorder %s1005_s16, %s998_s4 }
  0x77   : > { %p1002_p11 = pneg %p1001_p9  ;;  %p1008_p13 = por %p1007_p6, %p1006_p4 }
  0x79   : > { %p1009_p0 = pnand %p1008_p13, %p1002_p11 }
  0x7b   : > { %1012 = shalt.err (!%p1009_p0)
}
  0x7c   : > { %822 = dma.hbm_to_vmem [thread:$0]  (!%p1391_p5), %s1385_s1, 16, %s1387_s17, %s247_s5  }
  0x7d   : > { %p1571_p1 = scmp.ne.s32.totalorder %s1553_s30, 0 }
  0x7e   : > { %s1423_s9 = sand.u32 (!%p1571_p1), 1, %s1119_s22  }
  0x7f   : > { %265 = sbr.rel (%p1571_p1) target bundleno = 415 (0x19f), region = 40  ;;  %s726_s10 = sshll.u32 (!%p1571_p1), %s1423_s9, 3 }
  0x80   : > { %s268_s11 = scalar_lea.sflag (!%p1571_p1), [#allocation3], %s1423_s9  ;;  %s1427_s21 = scalar_lea.vmem (!%p1571_p1), [#allocation2], %s726_s10 }
  0x86   : > { %1086 = dma.done.wait (%p1296_p12), %s268_s11, 128  }
  0x87   : > { %1088 = vsyncadd (%p1296_p12), %s268_s11, 4294967168  ;;  %s276_s30 = sand.u32 1, %s1238_s29   ;;  %s278_s1 = sand.u32 1, %s1107_s19  }
  0x88   : > { %s277_s17 = scalar_lea.sflag [#allocation6], %s276_s30  ;;  %s1435_s18 = scalar_lea.vmem [#allocation5], %s278_s1 }
  0x89   : > { %p1572_p4 = scmp.ne.s32.totalorder %s1568_s12, 0 }
  0x8b   : > { %1090 = dma.done.wait (%p1572_p4), %s277_s17, 16  }
  0x8c   : > { %1092 = vsyncadd (%p1572_p4), %s277_s17, 4294967280  ;;  %p1573_p5 = scmp.eq.s32.totalorder %s1238_s29, 0 }
  0x8e   : > { %1094 = dma.done.wait (%p1573_p5), [#allocation6], 8192   ;;  %p1574_p7 = pmov %p1573_p5 }
  0x8f   : > { %v1150_v0 = vmov 0.0   ;;  %v344_v1 = vld [vmem:[#allocation7 + $0x8] sm:$0xff]  ;;  %v346_v3 = vld [vmem:[#allocation7 + $0x18] sm:$0xff]  ;;  %v343_v6 = vld [vmem:[#allocation7] sm:$0xff]  ;;  %p317_p12 = scmp.lt.s32.totalorder %s1131_s25, 1  ;;  %s1575_s5 = sld [smem:[#allocation18_spill]] }
  0x90   : > { %1096 = vsyncadd (%p1574_p7), [#allocation6], 4294959104  ;;  %493 = vmatprep.mubr.f32.mxu0 %v1150_v0  ;;  %564 = vmatprep.mubr.f32.mxu1 %v1150_v0  ;;  %v348_v2 = vld [vmem:[#allocation7 + $0x28] sm:$0xff]  ;;  %v350_v5 = vld [vmem:[#allocation7 + $0x38] sm:$0xff]  ;;  %s1576_s13 = sld [smem:[#allocation14_spill]]  ;;  %s728_s4 = sshll.u32 %s1423_s9, 5 }
  0x91   : > { %v738_v4 = vpack.c.bf16 %v348_v2, %v344_v1  ;;  %v347_v7 = vld [vmem:[#allocation7 + $0x20] sm:$0xff]  ;;  %v770_v8 = vpack.c.bf16 %v350_v5, %v346_v3  ;;  %v345_v10 = vld [vmem:[#allocation7 + $0x10] sm:$0xff]  ;;  %v352_v12 = vld [vmem:[#allocation7 + $0x48] sm:$0xff]  ;;  %s1449_s29 = scalar_select %p317_p12, %s1131_s25, 1 }
  0x92   : > { %v740_v9 = vpack.c.bf16 %v347_v7, %v343_v6  ;;  %v349_v11 = vld [vmem:[#allocation7 + $0x30] sm:$0xff]  ;;  %v356_v14 = vld [vmem:[#allocation7 + $0x68] sm:$0xff]  ;;  %v354_v15 = vld [vmem:[#allocation7 + $0x58] sm:$0xff]  ;;  %s734_s7 = sshll.u32 %s1131_s25, 3  ;;  %s1577_s11 = sld [smem:[#allocation20_spill]] }
  0x93   : > { %739 = vmatprep.subr.bf16.mxu0 %v738_v4  ;;  %v772_v13 = vpack.c.bf16 %v349_v11, %v345_v10  ;;  %v358_v16 = vld [vmem:[#allocation7 + $0x78] sm:$0xff]  ;;  %771 = vmatprep.subr.bf16.mxu1 %v770_v8  ;;  %v742_v17 = vpack.c.bf16 %v356_v14, %v352_v12  ;;  %v351_v19 = vld [vmem:[#allocation7 + $0x40] sm:$0xff]  ;;  %v353_v21 = vld [vmem:[#allocation7 + $0x50] sm:$0xff]  ;;  %s316_s1 = scalar_lea.vmem [#allocation8], %s728_s4  ;;  %s1579_s15 = sld [smem:[#allocation21_spill]] }
  0x94   : > { %741 = vmatpush1.bf16.msra.mxu0 %v740_v9  ;;  %v774_v18 = vpack.c.bf16 %v358_v16, %v354_v15  ;;  %v355_v20 = vld [vmem:[#allocation7 + $0x60] sm:$0xff]  ;;  %v357_v23 = vld [vmem:[#allocation7 + $0x70] sm:$0xff]  ;;  %v360_v24 = vld [vmem:[#allocation7 + $0x88] sm:$0xff]  ;;  %s592_s17 = sshll.u32 %s316_s1, 4  ;;  %s1468_s17 = int_to_ptr.vmem [resolvable:$true] %s592_s17 }
  0x95   : > { %773 = vmatpush1.bf16.msra.mxu1 %v772_v13  ;;  %v744_v22 = vpack.c.bf16 %v355_v20, %v351_v19  ;;  %v364_v25 = vld [vmem:[#allocation7 + $0xa8] sm:$0xff]  ;;  %743 = vmatprep.subr.bf16.mxu0 %v742_v17  ;;  %v776_v26 = vpack.c.bf16 %v357_v23, %v353_v21  ;;  %v362_v28 = vld [vmem:[#allocation7 + $0x98] sm:$0xff]  ;;  %v359_v30 = vld [vmem:[#allocation7 + $0x80] sm:$0xff]  ;;  %s319_s24 = scalar_lea.vmem %s1575_s5, %s1449_s29  ;;  %s576_s5 = scalar_lea.sflag [#allocation4], %s1423_s9 }
  0x96   : > { %775 = vmatprep.subr.bf16.mxu1 %v774_v18  ;;  %v746_v27 = vpack.c.bf16 %v364_v25, %v360_v24  ;;  %v366_v29 = vld [vmem:[#allocation7 + $0xb8] sm:$0xff]  ;;  %v363_v32 = vld [vmem:[#allocation7 + $0xa0] sm:$0xff]  ;;  %v361_v33 = vld [vmem:[#allocation7 + $0x90] sm:$0xff]  ;;  %s733_s8 = sshll.u32 %s1576_s13, 2  ;;  %s1151_s13 = smov [#allocation8]  }
  0x97   : > { %v778_v31 = vpack.c.bf16 %v366_v29, %v362_v28  ;;  %v365_v34 = vld [vmem:[#allocation7 + $0xb0] sm:$0xff]  ;;  %v748_v35 = vpack.c.bf16 %v363_v32, %v359_v30  ;;  %v368_v36 = vld [vmem:[#allocation7 + $0xc8] sm:$0xff]  ;;  %v370_v38 = vld [vmem:[#allocation7 + $0xd8] sm:$0xff]  ;;  %s1017_s4 = sshll.u32 %s1151_s13, 4  ;;  %s1018_s4 = int_to_ptr.vmem [resolvable:$false] %s1017_s4 }
  0x98   : > { %745 = vmatpush1.bf16.msra.mxu0 %v744_v22  ;;  %v372_v37 = vld [vmem:[#allocation7 + $0xe8] sm:$0xff]  ;;  %v780_v39 = vpack.c.bf16 %v365_v34, %v361_v33  ;;  %v374_v41 = vld [vmem:[#allocation7 + $0xf8] sm:$0xff]  ;;  %v367_v42 = vld [vmem:[#allocation7 + $0xc0] sm:$0xff]  ;;  %p1020_p9 = scmp.lt.s32.totalorder %s1468_s17, %s1018_s4 }
  0x99   : > { %777 = vmatpush1.bf16.msra.mxu1 %v776_v26  ;;  %747 = vmatprep.subr.bf16.mxu0 %v746_v27  ;;  %v750_v40 = vpack.c.bf16 %v372_v37, %v368_v36  ;;  %v371_v43 = vld [vmem:[#allocation7 + $0xe0] sm:$0xff]  ;;  %v782_v44 = vpack.c.bf16 %v374_v41, %v370_v38  ;;  %v369_v45 = vld [vmem:[#allocation7 + $0xd0] sm:$0xff]  ;;  %v376_v47 = vld [vmem:[#allocation7 + $0x108] sm:$0xff] }
  0x9a   : > { %779 = vmatprep.subr.bf16.mxu1 %v778_v31  ;;  %v373_v46 = vld [vmem:[#allocation7 + $0xf0] sm:$0xff]  ;;  %v380_v48 = vld [vmem:[#allocation7 + $0x128] sm:$0xff]  ;;  %v378_v49 = vld [vmem:[#allocation7 + $0x118] sm:$0xff]  ;;  %v752_v51 = vpack.c.bf16 %v371_v43, %v367_v42  ;;  %v409_v43 = vlaneseq }
  0x9b   : > { %v382_v50 = vld [vmem:[#allocation7 + $0x138] sm:$0xff]  ;;  %v784_v52 = vpack.c.bf16 %v373_v46, %v369_v45  ;;  %v754_v53 = vpack.c.bf16 %v380_v48, %v376_v47  ;;  %v375_v54 = vld [vmem:[#allocation7 + $0x100] sm:$0xff]  ;;  %v377_v56 = vld [vmem:[#allocation7 + $0x110] sm:$0xff] }
  0x9c   : > { %749 = vmatpush1.bf16.msra.mxu0 %v748_v35  ;;  %v379_v55 = vld [vmem:[#allocation7 + $0x120] sm:$0xff]  ;;  %v786_v57 = vpack.c.bf16 %v382_v50, %v378_v49  ;;  %v381_v58 = vld [vmem:[#allocation7 + $0x130] sm:$0xff]  ;;  %v384_v59 = vld [vmem:[#allocation7 + $0x148] sm:$0xff] }
  0x9d   : > { %781 = vmatpush1.bf16.msra.mxu1 %v780_v39  ;;  %751 = vmatprep.subr.bf16.mxu0 %v750_v40  ;;  %v388_v60 = vld [vmem:[#allocation7 + $0x168] sm:$0xff]  ;;  %v386_v61 = vld [vmem:[#allocation7 + $0x158] sm:$0xff]  ;;  %v756_v63 = vpack.c.bf16 %v379_v55, %v375_v54  ;;  %v788_v0 = vpack.c.bf16 %v381_v58, %v377_v56  ;;  %v383_v2 = vld [vmem:[#allocation7 + $0x140] sm:$0xff] }
  0x9e   : > { %783 = vmatprep.subr.bf16.mxu1 %v782_v44  ;;  %v390_v62 = vld [vmem:[#allocation7 + $0x178] sm:$0xff]  ;;  %v758_v1 = vpack.c.bf16 %v388_v60, %v384_v59  ;;  %v387_v3 = vld [vmem:[#allocation7 + $0x160] sm:$0xff]  ;;  %v385_v4 = vld [vmem:[#allocation7 + $0x150] sm:$0xff]  ;;  %v410_v44 = vshrl.u32 %v409_v43, 7 }
  0x9f   : > { %v790_v5 = vpack.c.bf16 %v390_v62, %v386_v61  ;;  %v389_v6 = vld [vmem:[#allocation7 + $0x170] sm:$0xff]  ;;  %v392_v7 = vld [vmem:[#allocation7 + $0x188] sm:$0xff]  ;;  %v394_v9 = vld [vmem:[#allocation7 + $0x198] sm:$0xff]  ;;  %v760_v11 = vpack.c.bf16 %v387_v3, %v383_v2 }
  0xa0   : > { %753 = vmatpush1.bf16.msra.mxu0 %v752_v51  ;;  %v396_v8 = vld [vmem:[#allocation7 + $0x1a8] sm:$0xff]  ;;  %v398_v10 = vld [vmem:[#allocation7 + $0x1b8] sm:$0xff]  ;;  %v391_v12 = vld [vmem:[#allocation7 + $0x180] sm:$0xff]  ;;  %v792_v15 = vpack.c.bf16 %v389_v6, %v385_v4  ;;  %v411_v45 = vsub.s32 0, %v410_v44  ;;  %v419_v46 = vsub.s32 2, %v410_v44  ;;  %v415_v48 = vsub.s32 1, %v410_v44 }
  0xa1   : > { %785 = vmatpush1.bf16.msra.mxu1 %v784_v52  ;;  %755 = vmatprep.subr.bf16.mxu0 %v754_v53  ;;  %v395_v13 = vld [vmem:[#allocation7 + $0x1a0] sm:$0xff]  ;;  %v393_v14 = vld [vmem:[#allocation7 + $0x190] sm:$0xff]  ;;  %v762_v16 = vpack.c.bf16 %v396_v8, %v392_v7  ;;  %v729_v19 = vld [vmem:[%s319_s24] ss:$0 sm:$0xff]  ;;  %v794_v20 = vpack.c.bf16 %v398_v10, %v394_v9  ;;  %v423_v49 = vsub.s32 3, %v410_v44  ;;  %s1013_s24 = scalar_lea.vmem %s1468_s17, 512 }
  0xa2   : > { %787 = vmatprep.subr.bf16.mxu1 %v786_v57  ;;  %v397_v17 = vld [vmem:[#allocation7 + $0x1b0] sm:$0xff]  ;;  %v400_v21 = vld [vmem:[#allocation7 + $0x1c8] sm:$0xff]  ;;  %v402_v25 = vld [vmem:[#allocation7 + $0x1d8] sm:$0xff]  ;;  %v764_v27 = vpack.c.bf16 %v395_v13, %v391_v12  ;;  %p1014_p2 = scmp.ne.s32.totalorder %s1468_s17, %s1013_s24 }
  0xa3   : > { %v320_v18 = vld [vmem:[%s1427_s21] sm:$0xff]  ;;  %v796_v29 = vpack.c.bf16 %v397_v17, %v393_v14  ;;  %v399_v31 = vld [vmem:[#allocation7 + $0x1c0] sm:$0xff]  ;;  %s588_s21 = sadd.s32 %s734_s7, %s733_s8  ;;  %s1019_s8 = scalar_lea.vmem %s1018_s4, 1024 }
  0xa4   : > { %757 = vmatpush1.bf16.msra.mxu0 %v756_v63  ;;  %v404_v22 = vld [vmem:[#allocation7 + $0x1e8] sm:$0xff]  ;;  %v328_v23 = vmul.f32 %v729_v19, %v320_v18  ;;  %v406_v26 = vld [vmem:[#allocation7 + $0x1f8] sm:$0xff]  ;;  %v403_v32 = vld [vmem:[#allocation7 + $0x1e0] sm:$0xff]  ;;  %s735_s30 = sshll.u32 %s588_s21, 7  ;;  %p1021_p11 = scmp.lt.s32.totalorder %s1019_s8, %s1013_s24 }
  0xa5   : > { %789 = vmatpush1.bf16.msra.mxu1 %v788_v0  ;;  %759 = vmatprep.subr.bf16.mxu0 %v758_v1  ;;  %v730_v24 = vld [vmem:[%s1435_s18] ss:$0 sm:$0xff]  ;;  %v766_v30 = vpack.c.bf16 %v404_v22, %v400_v21  ;;  %v798_v33 = vpack.c.bf16 %v406_v26, %v402_v25  ;;  %v401_v34 = vld [vmem:[#allocation7 + $0x1d0] sm:$0xff]  ;;  %v768_v37 = vpack.c.bf16 %v403_v32, %v399_v31  ;;  %s1578_s18 = sld [smem:[#allocation17_spill]]  ;;  %s1466_s12 = scalar_lea.hbm %s1579_s15, %s735_s30 }
  0xa6   : > { %791 = vmatprep.subr.bf16.mxu1 %v790_v5  ;;  %v336_v28 = vadd.f32 %v730_v24, %v328_v23  ;;  %v405_v35 = vld [vmem:[#allocation7 + $0x1f0] sm:$0xff]  ;;  %p1022_p6 = por %p1021_p11, %p1020_p9 }
  0xa7   : > { %v800_v39 = vpack.c.bf16 %v405_v35, %v401_v34  ;;  %v407_v47 = vld [vmem:[%s1577_s11] sm:$0xf] }
  0xa8   : > { %761 = vmatpush1.bf16.msra.mxu0 %v760_v11  ;;  %v338_v36 = vmin.f32 %v336_v28, 0.0  ;;  %vm337_vm0 = vcmp.gt.f32.partialorder %v336_v28, 0.0  ;;  %v412_v50 = vrot.slane %v407_v47, %v411_v45  ;;  %v420_v51 = vrot.slane %v407_v47, %v419_v46 }
  0xa9   : > { %793 = vmatpush1.bf16.msra.mxu1 %v792_v15  ;;  %763 = vmatprep.subr.bf16.mxu0 %v762_v16  ;;  %v416_v52 = vrot.slane %v407_v47, %v415_v48  ;;  %v424_v53 = vrot.slane %v407_v47, %v423_v49 }
  0xaa   : > { %795 = vmatprep.subr.bf16.mxu1 %v794_v20  ;;  %v339_v38 = vmul.f32 1.442695, %v338_v36 }
  0xab   : > { %p1580_p8 = scmp.ne.s32.totalorder %s1578_s18, 0 }
  0xac   : > { %765 = vmatpush1.bf16.msra.mxu0 %v764_v27  ;;  %923 = vpow2.f32 %v339_v38 }
  0xad   : > { %797 = vmatpush1.bf16.msra.mxu1 %v796_v29  ;;  %767 = vmatprep.subr.bf16.mxu0 %v766_v30  ;;  %p1015_p10 = pnand %p1014_p2, %p1580_p8 }
  0xae   : > { %799 = vmatprep.subr.bf16.mxu1 %v798_v33 }
  0xaf   : > { %p1016_p3 = pneg %p1015_p10 }
  0xb0   : > { %769 = vmatpush1.bf16.msra.mxu0 %v768_v37 }
  0xb1   : > { %801 = vmatpush1.bf16.msra.mxu1 %v800_v39  ;;  %p1023_p13 = pnand %p1022_p6, %p1016_p3 }
  0xb6   : > { %v924_v40 = vpop.eup %923 }
  0xb7   : > { %v731_v41 = vadd.f32 -1.0, %v924_v40 }
  0xb9   : > { %v342_v42 = vsel %vm337_vm0, %v336_v28, %v731_v41 }
  0xba   : > { %494 = vmatmul.mubr.f32.vlgmr.msra.gmra.mrb[0].mxu0 %v342_v42  ;;  %565 = vmatmul.mubr.f32.vlgmr.msra.gmra.mrb[0].mxu1 %v342_v42 }
 0x18d   : > { %v495_v54 = vpop.f32.mrb[0].mxu0  ;;  %v566_v55 = vpop.f32.mrb[0].mxu1 }
 0x18e   : > { %v496_v56 = vadd.f32 %v495_v54, %v412_v50  ;;  %v567_v57 = vadd.f32 %v566_v55, %v420_v51  ;;  %v497_v58 = vpop.f32.mrb[1].mxu0  ;;  %v568_v59 = vpop.f32.mrb[1].mxu1 }
 0x18f   : > { %v498_v60 = vadd.f32 %v497_v58, %v416_v52  ;;  %v569_v61 = vadd.f32 %v568_v59, %v424_v53 }
 0x190   : > { %571 = vst [vmem:[%s316_s1] sm:$0xff] %v496_v56  ;;  %573 = vst [vmem:[%s316_s1 + $0x10] sm:$0xff] %v567_v57 }
 0x191   : > { %572 = vst [vmem:[%s316_s1 + $0x8] sm:$0xff] %v498_v60  ;;  %574 = vst [vmem:[%s316_s1 + $0x18] sm:$0xff] %v569_v61 }
 0x192   : > { %1026 = shalt.err (!%p1023_p13)
}
 0x193   : > { %s1027_s9 = scalar_lea.hbm %s1466_s12, 512  ;;  %s1031_s10 = scalar_lea.hbm %s1579_s15, 2048 }
 0x194   : > { %p1028_p0 = scmp.ne.s32.totalorder %s1466_s12, %s1027_s9  ;;  %p1032_p5 = scmp.lt.u32.totalorder %s1466_s12, %s1579_s15 }
 0x195   : > { %p1033_p7 = scmp.lt.u32.totalorder %s1031_s10, %s1027_s9  ;;  %p1035_p2 = scmp.lt.u32.totalorder %s1027_s9, %s1466_s12 }
 0x196   : > { %p1029_p1 = pnand %p1028_p0, %p1580_p8 }
 0x197   : > { %p1034_p12 = por %p1033_p7, %p1032_p5 }
 0x198   : > { %p1030_p4 = pneg %p1029_p1 }
 0x199   : > { %p1036_p10 = por %p1035_p2, %p1034_p12 }
 0x19b   : > { %p1037_p3 = pnand %p1036_p10, %p1030_p4 }
 0x19d   : > { %1040 = shalt.err (!%p1037_p3)
}
 0x19e   : > { %810 = dma.vmem_to_hbm [thread:$0]  (%p1580_p8), %s1468_s17, 512, %s1466_s12, %s576_s5  }
 0x19f PF: > { %s1581_s30 = sld [smem:[#allocation13_spill]]  ;;  %p830_p9 = scmp.ge.s32.totalorder %s1143_s28, 2 }
 0x1a0   : > { %p1582_p11 = scmp.ne.s32.totalorder %s1563_s6, 0 }
 0x1a2   : > { %p824_p6 = pnand %p830_p9, %p1582_p11 }
 0x1a5   : > { %s604_s1 = sand.u32 1, %s1581_s30  }
 0x1a6   : > { %s605_s25 = scalar_lea.sflag [#allocation4], %s604_s1 }
 0x1a7   : > { %1098 = dma.done.wait (!%p824_p6), %s605_s25, 512  }
 0x1a8   : > { %1100 = vsyncadd (!%p824_p6), %s605_s25, 4294966784  ;;  %s24_s28 = sadd.s32 1, %s1143_s28   ;;  %s1583_s17 = sld [smem:[#allocation15_spill]] }
 0x1a9   : > { %p21_p13 = scmp.ge.s32.totalorder %s24_s28, 6   ;;  %s1584_s29 = sld [smem:[#allocation16_spill]] }
 0x1aa   : > { %s1585_s18 = smov %s1107_s19  ;;  %s1586_s19 = smov %s1111_s20 }
 0x1ab   : > { %s1587_s20 = smov %s1367_s14  ;;  %s1588_s21 = smov %s1119_s22 }
 0x1ac   : > { %s1589_s22 = smov %s1123_s23  ;;  %s1590_s23 = smov %s1318_s3 }
 0x1ad   : > { %s1591_s24 = smov %s1135_s26  ;;  %s1592_s25 = smov %s1139_s27 }
 0x1ae   : > { %s1593_s26 = smov %s1583_s17  ;;  %23 = sbr.rel (!%p21_p13) target bundleno = 16 (0x10), region = 105 }
 0x1af   : > { %s1594_s27 = smov %s1584_s29 }
 0x1b5   :  { %610 = vsyncpa [#allocation3], 1 }
 0x1b6   :  { %612 = vsyncpa [#allocation3 + $0x1], 1 }
 0x1b7   :  { %613 = vsyncpa [#allocation6], 1 }
 0x1b8   :  { %615 = vsyncpa [#allocation6 + $0x1], 1 }
 0x1b9   :  { %616 = vsyncpa [#allocation4], 1 }
 0x1ba   :  { %618 = vsyncpa [#allocation4 + $0x1], 1 }

</bundles_post_ra>
